<compile_context>
chip_gen: v7x
topology: tpu7x:2x2x1
jax: 0.10.0
libtpu: 0.0.40
codegen_flags: <defaults>
</compile_context>

<pallas_src>
import functools

import jax
import jax.numpy as jnp
from jax.experimental import pallas as pl
from jax.experimental.pallas import tpu as pltpu

K = 3             # conv kernel size (padding='same' -> pad 1)
POOL = 3          # MaxPool2d(kernel_size=3, stride=1), no padding
NEG_SLOPE = 0.01  # nn.LeakyReLU default
EPS = 1e-5        # nn.BatchNorm2d default


def fused_block_kernel(p_ref, w_ref, gb_ref, o_ref, *, batch, height, width, cout,
                       count):
    """Conv (one MXU matmul) + training-mode BN + LeakyReLU + 3x3/s1 max pool.

    p_ref:  (N*H, Kc_pad)       row-band patch matrix, bf16 (contraction padded to 128x)
    w_ref:  (Kc_pad, W*Cout)    banded conv weight, bf16
    gb_ref: (2, W*Cout)         [gamma, beta] tiled along W, f32
    o_ref:  (N, H-2, W*Cout)    pooled output, lane-dense 128-wide stores
                                (last 2*Cout lanes are garbage, sliced in wrapper)
    """
    lanes = width * cout
    h_out = height - (POOL - 1)

    # --- conv: ONE lane-dense MXU matmul, f32 accumulation; output is already in
    #     the (N*H, W*Cout) lane-dense layout (no in-kernel relayout). -------------
    y = jnp.dot(p_ref[...], w_ref[...], preferred_element_type=jnp.float32)

    # --- training-mode BatchNorm statistics (per channel), two-pass / stable -----
    # Lane j = w*Cout + c carries channel c.  A log2(W)-step rotate-accumulate
    # (XLU rolls, cyclic over the W groups) leaves EVERY lane holding its
    # channel's total, i.e. the stats come out already broadcast per lane.
    def lane_group_allsum(v):                       # v: (1, W*Cout)
        s = cout
        while s < lanes:                            # W must be a power of two
            v = v + pltpu.roll(v, s, axis=1)
            s *= 2
        return v

    inv_count = 1.0 / count
    mean_l = lane_group_allsum(jnp.sum(y, axis=0, keepdims=True)) * inv_count
    yc = y - mean_l                                 # centered activation (f32)
    var_l = lane_group_allsum(jnp.sum(yc * yc, axis=0, keepdims=True)) * inv_count

    gb = gb_ref[...]
    scale_l = gb[0:1, :] * jax.lax.rsqrt(var_l + EPS)      # rsqrt -> EUP slot
    z = yc * scale_l + gb[1:2, :]                          # folded BN affine
    z = jnp.where(z > 0, z, NEG_SLOPE * z)                 # LeakyReLU(0.01)

    # --- MaxPool2d(3, stride=1): separable.  Columns via lane rolls (XLU), then
    #     rows via sublane slices.  Static unroll over the (tiny) batch. ----------
    for b in range(batch):
        zb = z[b * height:(b + 1) * height, :]             # (H, W*Cout)
        c = zb
        for pw in range(1, POOL):
            # cyclic roll by (lanes - pw*cout) == logical shift of -pw*cout:
            # lane j picks up lane j + pw*cout (wrap-around only pollutes the
            # last 2*cout lanes, which are sliced away in the wrapper).
            c = jnp.maximum(c, pltpu.roll(zb, lanes - pw * cout, axis=1))
        r = c[0:h_out, :]
        for ph in range(1, POOL):
            r = jnp.maximum(r, c[ph:ph + h_out, :])
        o_ref[b] = r.astype(o_ref.dtype)                   # dense 128-lane store


def basic_conv_block(x_nchw, conv_weight, conv_bias, bn_gamma, bn_beta):
    """x_nchw: (N, Cin, H, W) f32; conv_weight: (Cout, Cin, K, K) (PyTorch layout).

    conv_bias is accepted for signature parity with nn.Conv2d but is mathematically
    a no-op under training-mode BatchNorm (the mean subtraction cancels it).
    """
    del conv_bias
    N, Cin, H, W = x_nchw.shape
    Cout = conv_weight.shape[0]
    pad = (K - 1) // 2
    Ho, Wo = H - (POOL - 1), W - (POOL - 1)
    WC = W * Cout
    assert WC % 128 == 0, "lane-dense layout assumes W*Cout is a multiple of 128"
    assert W & (W - 1) == 0, "rotate-accumulate stat fold assumes power-of-two W"

    # ---- wrapper glue (tiny XLA ops): layout + banded weight construction -------
    x_nhwc = jnp.transpose(x_nchw, (0, 2, 3, 1))
    xp = jnp.pad(x_nhwc, ((0, 0), (pad, pad), (pad, pad), (0, 0)))

    # Row-band patch matrix: row (n*H + h) holds the K padded input rows feeding
    # output row h; contraction index order = (kh, padded col wp, ci).
    bands = jnp.stack([xp[:, kh:kh + H] for kh in range(K)], axis=2)  # (N,H,K,W+2p,Cin)
    Kc = K * (W + 2 * pad) * Cin
    Kc_pad = ((Kc + 127) // 128) * 128                                # lane-dense contraction
    patches = bands.reshape(N * H, Kc)
    patches = jnp.pad(patches, ((0, 0), (0, Kc_pad - Kc))).astype(jnp.bfloat16)

    # Banded weight: wband[(kh, wp, ci), (w, c)] = conv_weight[c, ci, kh, wp - w]
    # for 0 <= wp - w < K, else 0.  Output column w*Cout + c is then exactly the
    # 'same'-conv response at spatial column w, channel c.
    wp_i = jnp.arange(W + 2 * pad)[:, None, None]
    w_i = jnp.arange(W)[None, :, None]
    kw_i = jnp.arange(K)[None, None, :]
    sel = (wp_i == w_i + kw_i).astype(conv_weight.dtype)              # (W+2p, W, K)
    wband = jnp.einsum('pwq,cihq->hpiwc', sel, conv_weight).reshape(Kc, WC)
    wband = jnp.pad(wband, ((0, Kc_pad - Kc), (0, 0))).astype(jnp.bfloat16)

    # gamma/beta packed into one (2, W*Cout) f32 operand (tiled along W).
    gb = jnp.stack([jnp.tile(bn_gamma, W), jnp.tile(bn_beta, W)]).astype(jnp.float32)

    kernel = functools.partial(
        fused_block_kernel,
        batch=N, height=H, width=W, cout=Cout, count=float(N * H * W))

    out_lane_dense = pl.pallas_call(
        kernel,
        grid=(1,),                       # whole problem in one VMEM-resident step
        in_specs=[
            pl.BlockSpec((N * H, Kc_pad), lambda i: (0, 0)),
            pl.BlockSpec((Kc_pad, WC), lambda i: (0, 0)),
            pl.BlockSpec((2, WC), lambda i: (0, 0)),
        ],
        out_specs=pl.BlockSpec((N, Ho, WC), lambda i: (0, 0, 0)),
        out_shape=jax.ShapeDtypeStruct((N, Ho, WC), x_nchw.dtype),
        compiler_params=pltpu.CompilerParams(
            dimension_semantics=("arbitrary",),
        ),
        cost_estimate=pl.CostEstimate(
            flops=2 * (N * H) * Kc_pad * WC,
            transcendentals=0,
            bytes_accessed=(N * H * Kc_pad * 2 + Kc_pad * WC * 2 + 2 * WC * 4
                            + N * Ho * WC * 4),
        ),
    )(patches, wband, gb)

    # Lane-dense (N, Ho, W*Cout) -> drop the 2*Cout wrap-around lanes -> NCHW.
    out = out_lane_dense.reshape(N, Ho, W, Cout)[:, :, :Wo, :]
    return jnp.transpose(out, (0, 3, 1, 2))


def _reference(x, w, b, gamma, beta):
    """Pure-JAX f32 reference of BasicConvBlock (training-mode BatchNorm)."""
    N, Cin, H, W = x.shape
    Cout = w.shape[0]
    xp = jnp.pad(x, ((0, 0), (0, 0), (1, 1), (1, 1)))
    y = jnp.zeros((N, Cout, H, W), jnp.float32)
    for kh in range(K):
        for kw in range(K):
            y = y + jnp.einsum('nihw,oi->nohw',
                               xp[:, :, kh:kh + H, kw:kw + W], w[:, :, kh, kw])
    y = y + b.reshape(1, -1, 1, 1)
    mean = jnp.mean(y, axis=(0, 2, 3), keepdims=True)
    var = jnp.mean((y - mean) ** 2, axis=(0, 2, 3), keepdims=True)
    y = ((y - mean) * jax.lax.rsqrt(var + EPS) * gamma.reshape(1, -1, 1, 1)
         + beta.reshape(1, -1, 1, 1))
    y = jnp.where(y > 0, y, NEG_SLOPE * y)
    Ho, Wo = H - (POOL - 1), W - (POOL - 1)
    out = y[:, :, 0:Ho, 0:Wo]
    for ph in range(POOL):
        for pw in range(POOL):
            out = jnp.maximum(out, y[:, :, ph:ph + Ho, pw:pw + Wo])
    return out


if __name__ == "__main__":
    key = jax.random.PRNGKey(0)
    k_x, k_w, k_b = jax.random.split(key, 3)

    N, Cin, Cout, H, W = 2, 4, 8, 16, 16

    x = jax.random.normal(k_x, (N, Cin, H, W), dtype=jnp.float32)

    # Deterministic synthetic parameters (shapes match nn.Conv2d / nn.BatchNorm2d).
    fan_in = Cin * K * K
    conv_weight = jax.random.normal(k_w, (Cout, Cin, K, K), dtype=jnp.float32) / jnp.sqrt(fan_in)
    conv_bias = jax.random.normal(k_b, (Cout,), dtype=jnp.float32) * 0.1
    bn_gamma = jnp.ones((Cout,), dtype=jnp.float32)   # BatchNorm2d default weight
    bn_beta = jnp.zeros((Cout,), dtype=jnp.float32)   # BatchNorm2d default bias

    out = jax.jit(basic_conv_block)(x, conv_weight, conv_bias, bn_gamma, bn_beta)
    jax.block_until_ready(out)
    assert out.shape == (N, Cout, H - 2, W - 2), out.shape

    # Loose check vs an f32 reference (kernel feeds the MXU bf16 operands).
    ref = _reference(x, conv_weight, conv_bias, bn_gamma, bn_beta)
    max_err = float(jnp.max(jnp.abs(out - ref)))
    assert max_err < 0.1, max_err

    print("KERNEL_OK")
</pallas_src>

<mosaic_0001>
module attributes {stable_mosaic.version = 11 : i64} {
  func.func @fused_block_kernel(%arg0: i32, %arg1: memref<32x256xbf16, #tpu.memory_space<vmem>>, %arg2: memref<256x128xbf16, #tpu.memory_space<vmem>>, %arg3: memref<2x128xf32, #tpu.memory_space<vmem>>, %arg4: memref<2x14x128xf32, #tpu.memory_space<vmem>>) attributes {dimension_semantics = [#tpu.dimension_semantics<arbitrary>], iteration_bounds = array<i64: 1>, scalar_prefetch = 0 : i64, scratch_operands = 0 : i64, tpu.core_type = #tpu.core_type<tc>, window_params = [{pipeline_mode = #tpu.pipeline_mode<synchronous>, transform_indices = @transform_0, window_bounds = array<i64: 32, 256>}, {pipeline_mode = #tpu.pipeline_mode<synchronous>, transform_indices = @transform_1, window_bounds = array<i64: 256, 128>}, {pipeline_mode = #tpu.pipeline_mode<synchronous>, transform_indices = @transform_2, window_bounds = array<i64: 2, 128>}, {pipeline_mode = #tpu.pipeline_mode<synchronous>, transform_indices = @transform_3, window_bounds = array<i64: 2, 14, 128>}]} {
    %c0 = arith.constant 0 : index
    %c0_0 = arith.constant 0 : index
    %0 = vector.load %arg1[%c0, %c0_0] : memref<32x256xbf16, #tpu.memory_space<vmem>>, vector<32x256xbf16>
    %c0_1 = arith.constant 0 : index
    %c0_2 = arith.constant 0 : index
    %1 = vector.load %arg2[%c0_1, %c0_2] : memref<256x128xbf16, #tpu.memory_space<vmem>>, vector<256x128xbf16>
    %cst = arith.constant dense<0.000000e+00> : vector<32x128xf32>
    %2 = tpu.matmul %0, %1, %cst {dimension_numbers = #tpu.dot_dimension_numbers<[1], [0], [0], [1], [0, 0, 1, 1], [], []>} : vector<32x256xbf16>, vector<256x128xbf16>, vector<32x128xf32> -> vector<32x128xf32>
    %cst_3 = arith.constant dense<0.000000e+00> : vector<128xf32>
    %3 = vector.multi_reduction <add>, %2, %cst_3 [0] : vector<32x128xf32> to vector<128xf32>
    %4 = vector.shape_cast %3 : vector<128xf32> to vector<1x128xf32>
    %c8_i32 = arith.constant 8 : i32
    %5 = tpu.dynamic_rotate %4 by %c8_i32 dim 1 : vector<1x128xf32>, i32 -> vector<1x128xf32>
    %6 = arith.addf %4, %5 : vector<1x128xf32>
    %c16_i32 = arith.constant 16 : i32
    %7 = tpu.dynamic_rotate %6 by %c16_i32 dim 1 : vector<1x128xf32>, i32 -> vector<1x128xf32>
    %8 = arith.addf %6, %7 : vector<1x128xf32>
    %c32_i32 = arith.constant 32 : i32
    %9 = tpu.dynamic_rotate %8 by %c32_i32 dim 1 : vector<1x128xf32>, i32 -> vector<1x128xf32>
    %10 = arith.addf %8, %9 : vector<1x128xf32>
    %c64_i32 = arith.constant 64 : i32
    %11 = tpu.dynamic_rotate %10 by %c64_i32 dim 1 : vector<1x128xf32>, i32 -> vector<1x128xf32>
    %12 = arith.addf %10, %11 : vector<1x128xf32>
    %cst_4 = arith.constant 0.001953125 : f32
    %13 = vector.broadcast %cst_4 : f32 to vector<1x128xf32>
    %14 = arith.mulf %12, %13 : vector<1x128xf32>
    %15 = vector.broadcast %14 : vector<1x128xf32> to vector<32x128xf32>
    %16 = arith.subf %2, %15 : vector<32x128xf32>
    %17 = arith.mulf %16, %16 : vector<32x128xf32>
    %cst_5 = arith.constant dense<0.000000e+00> : vector<128xf32>
    %18 = vector.multi_reduction <add>, %17, %cst_5 [0] : vector<32x128xf32> to vector<128xf32>
    %19 = vector.shape_cast %18 : vector<128xf32> to vector<1x128xf32>
    %c8_i32_6 = arith.constant 8 : i32
    %20 = tpu.dynamic_rotate %19 by %c8_i32_6 dim 1 : vector<1x128xf32>, i32 -> vector<1x128xf32>
    %21 = arith.addf %19, %20 : vector<1x128xf32>
    %c16_i32_7 = arith.constant 16 : i32
    %22 = tpu.dynamic_rotate %21 by %c16_i32_7 dim 1 : vector<1x128xf32>, i32 -> vector<1x128xf32>
    %23 = arith.addf %21, %22 : vector<1x128xf32>
    %c32_i32_8 = arith.constant 32 : i32
    %24 = tpu.dynamic_rotate %23 by %c32_i32_8 dim 1 : vector<1x128xf32>, i32 -> vector<1x128xf32>
    %25 = arith.addf %23, %24 : vector<1x128xf32>
    %c64_i32_9 = arith.constant 64 : i32
    %26 = tpu.dynamic_rotate %25 by %c64_i32_9 dim 1 : vector<1x128xf32>, i32 -> vector<1x128xf32>
    %27 = arith.addf %25, %26 : vector<1x128xf32>
    %cst_10 = arith.constant 0.001953125 : f32
    %28 = vector.broadcast %cst_10 : f32 to vector<1x128xf32>
    %29 = arith.mulf %27, %28 : vector<1x128xf32>
    %c0_11 = arith.constant 0 : index
    %c0_12 = arith.constant 0 : index
    %30 = vector.load %arg3[%c0_11, %c0_12] : memref<2x128xf32, #tpu.memory_space<vmem>>, vector<2x128xf32>
    %31 = vector.extract_strided_slice %30 {offsets = [0, 0], sizes = [1, 128], strides = [1, 1]} : vector<2x128xf32> to vector<1x128xf32>
    %cst_13 = arith.constant 9.99999974E-6 : f32
    %32 = vector.broadcast %cst_13 : f32 to vector<1x128xf32>
    %33 = arith.addf %29, %32 : vector<1x128xf32>
    %34 = math.rsqrt %33 : vector<1x128xf32>
    %35 = arith.mulf %31, %34 : vector<1x128xf32>
    %36 = vector.broadcast %35 : vector<1x128xf32> to vector<32x128xf32>
    %37 = arith.mulf %16, %36 : vector<32x128xf32>
    %38 = vector.extract_strided_slice %30 {offsets = [1, 0], sizes = [1, 128], strides = [1, 1]} : vector<2x128xf32> to vector<1x128xf32>
    %39 = vector.broadcast %38 : vector<1x128xf32> to vector<32x128xf32>
    %40 = arith.addf %37, %39 : vector<32x128xf32>
    %cst_14 = arith.constant 0.000000e+00 : f32
    %41 = vector.broadcast %cst_14 : f32 to vector<32x128xf32>
    %42 = arith.cmpf ogt, %40, %41 : vector<32x128xf32>
    %cst_15 = arith.constant 0.00999999977 : f32
    %43 = vector.broadcast %cst_15 : f32 to vector<32x128xf32>
    %44 = arith.mulf %43, %40 : vector<32x128xf32>
    %45 = arith.select %42, %40, %44 : vector<32x128xi1>, vector<32x128xf32>
    %46 = vector.extract_strided_slice %45 {offsets = [0, 0], sizes = [16, 128], strides = [1, 1]} : vector<32x128xf32> to vector<16x128xf32>
    %c120_i32 = arith.constant 120 : i32
    %47 = tpu.dynamic_rotate %46 by %c120_i32 dim 1 : vector<16x128xf32>, i32 -> vector<16x128xf32>
    %48 = arith.maximumf %46, %47 : vector<16x128xf32>
    %c112_i32 = arith.constant 112 : i32
    %49 = tpu.dynamic_rotate %46 by %c112_i32 dim 1 : vector<16x128xf32>, i32 -> vector<16x128xf32>
    %50 = arith.maximumf %48, %49 : vector<16x128xf32>
    %51 = vector.extract_strided_slice %50 {offsets = [0, 0], sizes = [14, 128], strides = [1, 1]} : vector<16x128xf32> to vector<14x128xf32>
    %52 = vector.extract_strided_slice %50 {offsets = [1, 0], sizes = [14, 128], strides = [1, 1]} : vector<16x128xf32> to vector<14x128xf32>
    %53 = arith.maximumf %51, %52 : vector<14x128xf32>
    %54 = vector.extract_strided_slice %50 {offsets = [2, 0], sizes = [14, 128], strides = [1, 1]} : vector<16x128xf32> to vector<14x128xf32>
    %55 = arith.maximumf %53, %54 : vector<14x128xf32>
    %c0_16 = arith.constant 0 : index
    %c0_17 = arith.constant 0 : index
    %c0_18 = arith.constant 0 : index
    %56 = vector.load %arg4[%c0_16, %c0_17, %c0_18] : memref<2x14x128xf32, #tpu.memory_space<vmem>>, vector<1x14x128xf32>
    %57 = vector.shape_cast %56 : vector<1x14x128xf32> to vector<14x128xf32>
    %58 = vector.shape_cast %55 : vector<14x128xf32> to vector<1x14x128xf32>
    tpu.vector_store %arg4[%c0_16, %c0_17, %c0_18], %58 {strides = array<i32>} : memref<2x14x128xf32, #tpu.memory_space<vmem>>, vector<1x14x128xf32>,
    %59 = vector.extract_strided_slice %45 {offsets = [16, 0], sizes = [16, 128], strides = [1, 1]} : vector<32x128xf32> to vector<16x128xf32>
    %c120_i32_19 = arith.constant 120 : i32
    %60 = tpu.dynamic_rotate %59 by %c120_i32_19 dim 1 : vector<16x128xf32>, i32 -> vector<16x128xf32>
    %61 = arith.maximumf %59, %60 : vector<16x128xf32>
    %c112_i32_20 = arith.constant 112 : i32
    %62 = tpu.dynamic_rotate %59 by %c112_i32_20 dim 1 : vector<16x128xf32>, i32 -> vector<16x128xf32>
    %63 = arith.maximumf %61, %62 : vector<16x128xf32>
    %64 = vector.extract_strided_slice %63 {offsets = [0, 0], sizes = [14, 128], strides = [1, 1]} : vector<16x128xf32> to vector<14x128xf32>
    %65 = vector.extract_strided_slice %63 {offsets = [1, 0], sizes = [14, 128], strides = [1, 1]} : vector<16x128xf32> to vector<14x128xf32>
    %66 = arith.maximumf %64, %65 : vector<14x128xf32>
    %67 = vector.extract_strided_slice %63 {offsets = [2, 0], sizes = [14, 128], strides = [1, 1]} : vector<16x128xf32> to vector<14x128xf32>
    %68 = arith.maximumf %66, %67 : vector<14x128xf32>
    %c1 = arith.constant 1 : index
    %c0_21 = arith.constant 0 : index
    %c0_22 = arith.constant 0 : index
    %69 = vector.load %arg4[%c1, %c0_21, %c0_22] : memref<2x14x128xf32, #tpu.memory_space<vmem>>, vector<1x14x128xf32>
    %70 = vector.shape_cast %69 : vector<1x14x128xf32> to vector<14x128xf32>
    %71 = vector.shape_cast %68 : vector<14x128xf32> to vector<1x14x128xf32>
    tpu.vector_store %arg4[%c1, %c0_21, %c0_22], %71 {strides = array<i32>} : memref<2x14x128xf32, #tpu.memory_space<vmem>>, vector<1x14x128xf32>,
    return
  }
  func.func @transform_0(%arg0: i32) -> (i32, i32) {
    %c0_i32 = arith.constant 0 : i32
    %c0_i32_0 = arith.constant 0 : i32
    %c0_i32_1 = arith.constant 0 : i32
    return %c0_i32, %c0_i32_0 : i32, i32
  }
  func.func @transform_1(%arg0: i32) -> (i32, i32) {
    %c0_i32 = arith.constant 0 : i32
    %c0_i32_0 = arith.constant 0 : i32
    %c0_i32_1 = arith.constant 0 : i32
    return %c0_i32, %c0_i32_0 : i32, i32
  }
  func.func @transform_2(%arg0: i32) -> (i32, i32) {
    %c0_i32 = arith.constant 0 : i32
    %c0_i32_0 = arith.constant 0 : i32
    %c0_i32_1 = arith.constant 0 : i32
    return %c0_i32, %c0_i32_0 : i32, i32
  }
  func.func @transform_3(%arg0: i32) -> (i32, i32, i32) {
    %c0_i32 = arith.constant 0 : i32
    %c0_i32_0 = arith.constant 0 : i32
    %c0_i32_1 = arith.constant 0 : i32
    %c0_i32_2 = arith.constant 0 : i32
    return %c0_i32, %c0_i32_0, %c0_i32_1 : i32, i32, i32
  }
}

</mosaic_0001>

<bundles_post_ra>
// kernel: tile.13
= control target key start
LH: loop header
LB: loop body
LE: loop exit
PB: predicated region body
PF: predicated region fallthrough
CT: control target
= control target key end

     0   :  { %s28_s0 = inlined_call_operand.vmem [shape: f32[8], index: 0, kind: input, shape index: {}]   ;;  %s29_s1 = inlined_call_operand.vmem [shape: f32[16,8], index: 1, kind: output, shape index: {}]  }
   0x1   :  { %v4_v0 = vld [vmem:[%s28_s0] ss:$0 sm:$0xff] }
   0x2   :  { %5 = vst [vmem:[%s29_s1] sm:$0xff] %v4_v0  ;;  %8 = vst [vmem:[%s29_s1 + $0x8] sm:$0xff] %v4_v0 }

// kernel: tile.18
= control target key start
LH: loop header
LB: loop body
LE: loop exit
PB: predicated region body
PF: predicated region fallthrough
CT: control target
= control target key end

     0   :  { %s131_s10 = smov 120   ;;  %s132_s11 = smov 104   ;;  %vm3_vm0 = vcmask 64512   ;;  %vm9_vm1 = vcmask 1048512   ;;  %vm15_vm2 = vcmask 982912   ;;  %vm21_vm3 = vcmask 917312   ;;  %s207_s0 = inlined_call_operand.vmem [shape: f32[16,8], index: 0, kind: input, shape index: {}]   ;;  %s208_s1 = inlined_call_operand.vmem [shape: f32[1,128], index: 1, kind: output, shape index: {}]  }
   0x1   :  { %v101_v0 = vld [vmem:[%s207_s0 + $0xf] sm:$0x1]   ;;  %v103_v1 = vld [vmem:[%s207_s0 + $0xd] sm:$0x1]   ;;  %v102_v2 = vld [vmem:[%s207_s0 + $0xe] sm:$0x1]  }
   0x2   :  { %7 = vrot.lane.b32.xlu0 %v101_v0, %s131_s10  ;;  %19 = vrot.lane.b32.xlu1 %v103_v1, %s132_s11  ;;  %v104_v3 = vld [vmem:[%s207_s0 + $0xc] sm:$0x1]   ;;  %s133_s16 = smov 112   ;;  %s134_s17 = smov 96   ;;  %v105_v4 = vld [vmem:[%s207_s0 + $0xb] sm:$0x1]  }
   0x3   :  { %v106_v5 = vld [vmem:[%s207_s0 + $0xa] sm:$0x1]   ;;  %v2_v6 = vld [vmem:[%s207_s0] sm:$0x1]   ;;  %s135_s24 = smov 88   ;;  %s136_s25 = smov 80  }
   0x4   :  { %4 = vst.msk [vmem:[#allocation0] sm:$0x1] %vm3_vm0, %v2_v6   ;;  %v107_v7 = vld [vmem:[%s207_s0 + $0x9] sm:$0x1]   ;;  %v108_v8 = vld [vmem:[%s207_s0 + $0x8] sm:$0x1]  }
   0x5   :  { %s137_s30 = smov 72   ;;  %s138_s2 = smov 64   ;;  %v109_v9 = vld [vmem:[%s207_s0 + $0x7] sm:$0x1]   ;;  %v110_v10 = vld [vmem:[%s207_s0 + $0x6] sm:$0x1]  }
   0x6   :  { %13 = vrot.lane.b32.xlu0 %v102_v2, %s133_s16  ;;  %25 = vrot.lane.b32.xlu1 %v104_v3, %s134_s17  ;;  %s139_s7 = smov 56   ;;  %s140_s8 = smov 48   ;;  %v111_v11 = vld [vmem:[%s207_s0 + $0x5] sm:$0x1]   ;;  %v112_v12 = vld [vmem:[%s207_s0 + $0x4] sm:$0x1]  }
   0x7   :  { %s141_s13 = smov 40   ;;  %s142_s14 = smov 32   ;;  %v113_v13 = vld [vmem:[%s207_s0 + $0x3] sm:$0x1]   ;;  %v114_v14 = vld [vmem:[%s207_s0 + $0x2] sm:$0x1]  }
   0x8   :  { %s143_s19 = smov 24   ;;  %s144_s20 = smov 16   ;;  %v115_v15 = vld [vmem:[%s207_s0 + $0x1] sm:$0x1]   ;;  %vm27_vm4 = vcmask 851712   ;;  %vm33_vm5 = vcmask 786112  }
   0x9   :  { %s145_s0 = smov 8   ;;  %vm39_vm6 = vcmask 720512   ;;  %vm45_vm7 = vcmask 654912   ;;  %vm51_vm8 = vcmask 589312   ;;  %vm57_vm9 = vcmask 523712  }
   0xa   :  { %31 = vrot.lane.b32.xlu0 %v105_v4, %s135_s24  ;;  %37 = vrot.lane.b32.xlu1 %v106_v5, %s136_s25  ;;  %vm63_vm10 = vcmask 458112   ;;  %vm69_vm11 = vcmask 392512   ;;  %vm75_vm12 = vcmask 326912   ;;  %vm81_vm13 = vcmask 261312  }
   0xb   :  { %vm87_vm14 = vcmask 195712   ;;  %vm93_vm15 = vcmask 130112  }
   0xe   :  { %43 = vrot.lane.b32.xlu0 %v107_v7, %s137_s30  ;;  %49 = vrot.lane.b32.xlu1 %v108_v8, %s138_s2 }
  0x12   :  { %55 = vrot.lane.b32.xlu0 %v109_v9, %s139_s7  ;;  %61 = vrot.lane.b32.xlu1 %v110_v10, %s140_s8 }
  0x16   :  { %67 = vrot.lane.b32.xlu0 %v111_v11, %s141_s13  ;;  %73 = vrot.lane.b32.xlu1 %v112_v12, %s142_s14 }
  0x1a   :  { %79 = vrot.lane.b32.xlu0 %v113_v13, %s143_s19  ;;  %85 = vrot.lane.b32.xlu1 %v114_v14, %s144_s20 }
  0x1e   :  { %91 = vrot.lane.b32.xlu0 %v115_v15, %s145_s0 }
  0x74   :  { %v8_v16 = vpop.permute.xlu0 %7   ;;  %v20_v17 = vpop.permute.xlu1 %19  }
  0x75   :  { %10 = vst.msk [vmem:[#allocation0] sm:$0x1] %vm9_vm1, %v8_v16  }
  0x78   :  { %v14_v18 = vpop.permute.xlu0 %13   ;;  %v26_v19 = vpop.permute.xlu1 %25  }
  0x79   :  { %16 = vst.msk [vmem:[#allocation0] sm:$0x1] %vm15_vm2, %v14_v18  }
  0x7a   :  { %22 = vst.msk [vmem:[#allocation0] sm:$0x1] %vm21_vm3, %v20_v17  }
  0x7b   :  { %28 = vst.msk [vmem:[#allocation0] sm:$0x1] %vm27_vm4, %v26_v19  }
  0x7c   :  { %v32_v20 = vpop.permute.xlu0 %31   ;;  %v38_v21 = vpop.permute.xlu1 %37  }
  0x7d   :  { %34 = vst.msk [vmem:[#allocation0] sm:$0x1] %vm33_vm5, %v32_v20  }
  0x7e   :  { %40 = vst.msk [vmem:[#allocation0] sm:$0x1] %vm39_vm6, %v38_v21  }
  0x80   :  { %v44_v22 = vpop.permute.xlu0 %43   ;;  %v50_v23 = vpop.permute.xlu1 %49  }
  0x81   :  { %46 = vst.msk [vmem:[#allocation0] sm:$0x1] %vm45_vm7, %v44_v22  }
  0x82   :  { %52 = vst.msk [vmem:[#allocation0] sm:$0x1] %vm51_vm8, %v50_v23  }
  0x84   :  { %v56_v24 = vpop.permute.xlu0 %55   ;;  %v62_v25 = vpop.permute.xlu1 %61  }
  0x85   :  { %58 = vst.msk [vmem:[#allocation0] sm:$0x1] %vm57_vm9, %v56_v24  }
  0x86   :  { %64 = vst.msk [vmem:[#allocation0] sm:$0x1] %vm63_vm10, %v62_v25  }
  0x88   :  { %v68_v26 = vpop.permute.xlu0 %67   ;;  %v74_v27 = vpop.permute.xlu1 %73  }
  0x89   :  { %70 = vst.msk [vmem:[#allocation0] sm:$0x1] %vm69_vm11, %v68_v26  }
  0x8a   :  { %76 = vst.msk [vmem:[#allocation0] sm:$0x1] %vm75_vm12, %v74_v27  }
  0x8c   :  { %v80_v28 = vpop.permute.xlu0 %79   ;;  %v86_v29 = vpop.permute.xlu1 %85  }
  0x8d   :  { %82 = vst.msk [vmem:[#allocation0] sm:$0x1] %vm81_vm13, %v80_v28  }
  0x8e   :  { %88 = vst.msk [vmem:[#allocation0] sm:$0x1] %vm87_vm14, %v86_v29  }
  0x90   :  { %v92_v30 = vpop.permute.xlu0 %91  }
  0x91   :  { %94 = vst.msk [vmem:[#allocation0] sm:$0x1] %vm93_vm15, %v92_v30  }
  0x98   :  { %v98_v31 = vld [vmem:[#allocation0] sm:$0x1] }
  0x99   :  { %100 = vst [vmem:[%s208_s1] sm:$0x1] %v98_v31 }

// kernel: basic_conv_block.1
= control target key start
LH: loop header
LB: loop body
LE: loop exit
PB: predicated region body
PF: predicated region fallthrough
CT: control target
= control target key end

     0   :  { %s469_s25 = smov 32   ;;  %s470_s26 = smov 64   ;;  %v238_v47 = vlaneseq  ;;  %vm318_vm4 = vcmask 1046528   ;;  %vm326_vm5 = vcmask 1045504   ;;  %s580_s1 = inlined_call_operand.vmem [shape: bf16[256,128], index: 1, kind: input, shape index: {}]   ;;  %s581_s0 = inlined_call_operand.vmem [shape: bf16[32,256], index: 0, kind: input, shape index: {}]   ;;  %s582_s2 = inlined_call_operand.vmem [shape: f32[2,128], index: 2, kind: input, shape index: {}]   ;;  %s583_s3 = inlined_call_operand.vmem [shape: f32[2,14,128], index: 3, kind: output, shape index: {}]  }
   0x1   :  { %v443_v0 = vld [vmem:[%s580_s1 + $0x40] sm:$0xff]   ;;  %v445_v2 = vld [vmem:[%s580_s1 + $0x48] sm:$0xff]   ;;  %v447_v4 = vld [vmem:[%s580_s1 + $0x50] sm:$0xff]   ;;  %s472_s29 = smov 112  }
   0x2   :  { %v444_v1 = vld [vmem:[%s580_s1] sm:$0xff]   ;;  %393 = vmatprep.subr.bf16.mxu0 %v443_v0  ;;  %421 = vmatprep.subr.bf16.mxu1 %v443_v0  ;;  %v446_v3 = vld [vmem:[%s580_s1 + $0x8] sm:$0xff]   ;;  %v448_v5 = vld [vmem:[%s580_s1 + $0x10] sm:$0xff]   ;;  %v239_v48 = vshrl.u32 %v238_v47, 7 }
   0x3   :  { %394 = vmatpush3.bf16.msra.mxu0 %v444_v1  ;;  %429 = vmatpush3.bf16.msra.mxu1 %v444_v1  ;;  %v449_v6 = vld [vmem:[%s580_s1 + $0x58] sm:$0xff]   ;;  %v451_v8 = vld [vmem:[%s580_s1 + $0x60] sm:$0xff]   ;;  %v453_v10 = vld [vmem:[%s580_s1 + $0x68] sm:$0xff]  }
   0x4   :  { %395 = vmatprep.subr.bf16.mxu0 %v445_v2  ;;  %422 = vmatprep.subr.bf16.mxu1 %v445_v2  ;;  %v450_v7 = vld [vmem:[%s580_s1 + $0x18] sm:$0xff]   ;;  %v452_v9 = vld [vmem:[%s580_s1 + $0x20] sm:$0xff]   ;;  %v454_v13 = vld [vmem:[%s580_s1 + $0x28] sm:$0xff]   ;;  %v240_v50 = vsub.s32 0, %v239_v48 }
   0x5   :  { %v461_v11 = vld [vmem:[%s581_s0 + $0x4] ss:$8 sps:$4 sm:$0xff]   ;;  %v464_v12 = vld [vmem:[%s581_s0 + $0x14] ss:$8 sps:$4 sm:$0xff]   ;;  %v459_v18 = vld [vmem:[%s581_s0] ss:$8 sps:$4 sm:$0xff]  }
   0x6   :  { %v455_v14 = vld [vmem:[%s580_s1 + $0x70] sm:$0xff]   ;;  %199 = vmatprep.mubr.bf16.mxu0 %v461_v11  ;;  %207 = vmatprep.mubr.bf16.mxu1 %v464_v12  ;;  %v457_v16 = vld [vmem:[%s580_s1 + $0x78] sm:$0xff]  }
   0x7   :  { %396 = vmatpush3.bf16.msra.mxu0 %v446_v3  ;;  %430 = vmatpush3.bf16.msra.mxu1 %v446_v3  ;;  %v456_v15 = vld [vmem:[%s580_s1 + $0x30] sm:$0xff]   ;;  %v458_v17 = vld [vmem:[%s580_s1 + $0x38] sm:$0xff]   ;;  %s468_s1 = smov 16  }
   0x8   :  { %397 = vmatprep.subr.bf16.mxu0 %v447_v4  ;;  %423 = vmatprep.subr.bf16.mxu1 %v447_v4  ;;  %v462_v19 = vld [vmem:[%s581_s0 + $0x10] ss:$8 sps:$4 sm:$0xff]   ;;  %s467_s0 = smov 8  }
   0xb   :  { %398 = vmatpush3.bf16.msra.mxu0 %v448_v5  ;;  %431 = vmatpush3.bf16.msra.mxu1 %v448_v5 }
   0xc   :  { %399 = vmatprep.subr.bf16.mxu0 %v449_v6  ;;  %424 = vmatprep.subr.bf16.mxu1 %v449_v6 }
   0xf   :  { %400 = vmatpush3.bf16.msra.mxu0 %v450_v7  ;;  %432 = vmatpush3.bf16.msra.mxu1 %v450_v7 }
  0x10   :  { %401 = vmatprep.subr.bf16.mxu0 %v451_v8  ;;  %425 = vmatprep.subr.bf16.mxu1 %v451_v8 }
  0x13   :  { %402 = vmatpush3.bf16.msra.mxu0 %v452_v9  ;;  %433 = vmatpush3.bf16.msra.mxu1 %v452_v9 }
  0x14   :  { %403 = vmatprep.subr.bf16.mxu0 %v453_v10  ;;  %426 = vmatprep.subr.bf16.mxu1 %v453_v10 }
  0x17   :  { %404 = vmatpush3.bf16.msra.mxu0 %v454_v13  ;;  %434 = vmatpush3.bf16.msra.mxu1 %v454_v13 }
  0x18   :  { %405 = vmatprep.subr.bf16.mxu0 %v455_v14  ;;  %427 = vmatprep.subr.bf16.mxu1 %v455_v14 }
  0x1b   :  { %406 = vmatpush3.bf16.msra.mxu0 %v456_v15  ;;  %435 = vmatpush3.bf16.msra.mxu1 %v456_v15 }
  0x1c   :  { %407 = vmatprep.subr.bf16.mxu0 %v457_v16  ;;  %428 = vmatprep.subr.bf16.mxu1 %v457_v16 }
  0x1f   :  { %408 = vmatpush3.bf16.msra.mxu0 %v458_v17  ;;  %436 = vmatpush3.bf16.msra.mxu1 %v458_v17  ;;  %v272_v17 = vld [vmem:[%s582_s2] sm:$0x3]  ;;  %s471_s2 = smov 120  }
  0x22   :  { %200 = vmatmul.mubr.bf16.vlgmr.msra.gmra.mrb[0].mxu0 %v459_v18  ;;  %208 = vmatmul.mubr.bf16.vlgmr.msra.gmra.mrb[0].mxu1 %v462_v19  ;;  %v286_v18 = vsub.s32 1, %v239_v48 }
  0xf5   :  { %v409_v20 = vpop.f32.mrb[0].mxu0  ;;  %v415_v21 = vpop.f32.mrb[0].mxu1 }
  0xf6   :  { %v410_v22 = vpop.f32.mrb[1].mxu0  ;;  %v416_v23 = vpop.f32.mrb[1].mxu1 }
  0xf7   :  { %v411_v24 = vadd.f32 %v410_v22, %v409_v20  ;;  %v412_v25 = vpop.f32.mrb[2].mxu0  ;;  %v417_v26 = vadd.f32 %v416_v23, %v415_v21  ;;  %v418_v27 = vpop.f32.mrb[2].mxu1  ;;  %v287_v21 = vrot.slane %v272_v17, %v286_v18 }
  0xf8   :  { %v413_v28 = vpop.f32.mrb[3].mxu0  ;;  %v419_v29 = vpop.f32.mrb[3].mxu1 }
  0xf9   :  { %v414_v30 = vadd.f32 %v413_v28, %v412_v25  ;;  %v420_v31 = vadd.f32 %v419_v29, %v418_v27 }
  0xfb   :  { %v216_v32 = vadd.f32 %v414_v30, %v411_v24 }
  0xfd   :  { %v217_v33 = vadd.f32 %v417_v26, %v216_v32 }
  0xff   :  { %v218_v34 = vadd.f32 %v420_v31, %v217_v33 }
 0x101   :  { %v219_v35 = vrot.slane %v218_v34, 4 }
 0x103   :  { %v220_v36 = vadd.f32 %v219_v35, %v218_v34 }
 0x105   :  { %v221_v37 = vrot.slane %v220_v36, 2 }
 0x107   :  { %v222_v38 = vadd.f32 %v221_v37, %v220_v36 }
 0x109   :  { %v223_v39 = vrot.slane %v222_v38, 1 }
 0x10b   :  { %v224_v40 = vadd.f32 %v223_v39, %v222_v38 }
 0x10d   :  { %225 = vrot.lane.b32.xlu0 %v224_v40, %s467_s0 }
 0x17f   :  { %v226_v41 = vpop.permute.xlu0 %225 }
 0x180   :  { %v227_v42 = vadd.f32 %v226_v41, %v224_v40 }
 0x182   :  { %228 = vrot.lane.b32.xlu0 %v227_v42, %s468_s1 }
 0x1f4   :  { %v229_v43 = vpop.permute.xlu0 %228 }
 0x1f5   :  { %v230_v44 = vadd.f32 %v229_v43, %v227_v42 }
 0x1f7   :  { %231 = vrot.lane.b32.xlu1 %v230_v44, %s469_s25 }
 0x269   :  { %v232_v45 = vpop.permute.xlu1 %231 }
 0x26a   :  { %v233_v46 = vadd.f32 %v232_v45, %v230_v44 }
 0x26c   :  { %234 = vrot.lane.b32.xlu1 %v233_v46, %s470_s26 }
 0x2de   :  { %v235_v49 = vpop.permute.xlu1 %234 }
 0x2df   :  { %v236_v51 = vadd.f32 %v235_v49, %v233_v46 }
 0x2e1   :  { %v237_v52 = vmul.f32 0.001953125, %v236_v51 }
 0x2e3   :  { %v241_v53 = vrot.slane %v237_v52, %v240_v50 }
 0x2e5   :  { %v242_v54 = vsub.f32 %v411_v24, %v241_v53  ;;  %v243_v55 = vsub.f32 %v414_v30, %v241_v53  ;;  %v244_v56 = vsub.f32 %v417_v26, %v241_v53  ;;  %v245_v57 = vsub.f32 %v420_v31, %v241_v53 }
 0x2e7   :  { %v246_v58 = vmul.f32 %v242_v54, %v242_v54  ;;  %v247_v59 = vmul.f32 %v243_v55, %v243_v55  ;;  %v248_v60 = vmul.f32 %v244_v56, %v244_v56  ;;  %v249_v62 = vmul.f32 %v245_v57, %v245_v57 }
 0x2e9   :  { %v250_v61 = vadd.f32 %v247_v59, %v246_v58 }
 0x2eb   :  { %v251_v63 = vadd.f32 %v250_v61, %v248_v60 }
 0x2ed   :  { %v252_v0 = vadd.f32 %v251_v63, %v249_v62 }
 0x2ef   :  { %v253_v1 = vrot.slane %v252_v0, 4 }
 0x2f1   :  { %v254_v2 = vadd.f32 %v253_v1, %v252_v0 }
 0x2f3   :  { %v255_v3 = vrot.slane %v254_v2, 2 }
 0x2f5   :  { %v256_v4 = vadd.f32 %v255_v3, %v254_v2 }
 0x2f7   :  { %v257_v5 = vrot.slane %v256_v4, 1 }
 0x2f9   :  { %v258_v6 = vadd.f32 %v257_v5, %v256_v4 }
 0x2fb   :  { %259 = vrot.lane.b32.xlu0 %v258_v6, %s467_s0 }
 0x36d   :  { %v260_v7 = vpop.permute.xlu0 %259 }
 0x36e   :  { %v261_v8 = vadd.f32 %v260_v7, %v258_v6 }
 0x370   :  { %262 = vrot.lane.b32.xlu1 %v261_v8, %s468_s1 }
 0x3e2   :  { %v263_v9 = vpop.permute.xlu1 %262 }
 0x3e3   :  { %v264_v10 = vadd.f32 %v263_v9, %v261_v8 }
 0x3e5   :  { %265 = vrot.lane.b32.xlu0 %v264_v10, %s469_s25 }
 0x457   :  { %v266_v11 = vpop.permute.xlu0 %265 }
 0x458   :  { %v267_v12 = vadd.f32 %v266_v11, %v264_v10 }
 0x45a   :  { %268 = vrot.lane.b32.xlu1 %v267_v12, %s470_s26 }
 0x4cc   :  { %v269_v13 = vpop.permute.xlu1 %268 }
 0x4cd   :  { %v270_v14 = vadd.f32 %v269_v13, %v267_v12 }
 0x4cf   :  { %v271_v15 = vmul.f32 0.001953125, %v270_v14 }
 0x4d1   :  { %v273_v16 = vadd.f32 1e-05, %v271_v15 }
 0x4d3   :  { %465 = vrsqrt.f32 %v273_v16 }
 0x4dd   :  { %v466_v19 = vpop.eup %465 }
 0x4de   :  { %v275_v20 = vmul.f32 %v466_v19, %v272_v17 }
 0x4e0   :  { %v279_v22 = vrot.slane %v275_v20, %v240_v50 }
 0x4e2   :  { %v281_v23 = vmul.f32 %v279_v22, %v243_v55  ;;  %v280_v24 = vmul.f32 %v279_v22, %v242_v54  ;;  %v283_v25 = vmul.f32 %v279_v22, %v245_v57  ;;  %v282_v26 = vmul.f32 %v279_v22, %v244_v56 }
 0x4e4   :  { %v289_v27 = vadd.f32 %v287_v21, %v281_v23  ;;  %v288_v28 = vadd.f32 %v287_v21, %v280_v24  ;;  %v291_v29 = vadd.f32 %v287_v21, %v283_v25  ;;  %v290_v30 = vadd.f32 %v287_v21, %v282_v26 }
 0x4e6   :  { %vm293_vm0 = vcmp.gt.f32.partialorder %v289_v27, 0.0  ;;  %v297_v31 = vmul.f32 0.01, %v289_v27  ;;  %vm292_vm1 = vcmp.gt.f32.partialorder %v288_v28, 0.0  ;;  %v296_v32 = vmul.f32 0.01, %v288_v28 }
 0x4e7   :  { %v299_v35 = vmul.f32 0.01, %v291_v29  ;;  %v298_v36 = vmul.f32 0.01, %v290_v30  ;;  %vm295_vm2 = vcmp.gt.f32.partialorder %v291_v29, 0.0  ;;  %vm294_vm3 = vcmp.gt.f32.partialorder %v290_v30, 0.0 }
 0x4e8   :  { %v301_v33 = vsel %vm293_vm0, %v289_v27, %v297_v31  ;;  %v300_v34 = vsel %vm292_vm1, %v288_v28, %v296_v32 }
 0x4e9   :  { %306 = vrot.lane.b32.xlu1 %v301_v33, %s471_s2  ;;  %304 = vrot.lane.b32.xlu0 %v300_v34, %s471_s2  ;;  %v303_v37 = vsel %vm295_vm2, %v291_v29, %v299_v35  ;;  %v302_v38 = vsel %vm294_vm3, %v290_v30, %v298_v36 }
 0x4ed   :  { %338 = vrot.lane.b32.xlu1 %v303_v37, %s471_s2  ;;  %336 = vrot.lane.b32.xlu0 %v302_v38, %s471_s2 }
 0x4f1   :  { %312 = vrot.lane.b32.xlu1 %v301_v33, %s472_s29  ;;  %310 = vrot.lane.b32.xlu0 %v300_v34, %s472_s29 }
 0x4f5   :  { %344 = vrot.lane.b32.xlu1 %v303_v37, %s472_s29  ;;  %342 = vrot.lane.b32.xlu0 %v302_v38, %s472_s29 }
 0x55b   :  { %v307_v39 = vpop.permute.xlu1 %306  ;;  %v305_v40 = vpop.permute.xlu0 %304 }
 0x55c   :  { %v309_v43 = vmax.f32 %v301_v33, %v307_v39  ;;  %v308_v44 = vmax.f32 %v300_v34, %v305_v40 }
 0x55f   :  { %v339_v41 = vpop.permute.xlu1 %338  ;;  %v337_v42 = vpop.permute.xlu0 %336 }
 0x560   :  { %v341_v49 = vmax.f32 %v303_v37, %v339_v41  ;;  %v340_v54 = vmax.f32 %v302_v38, %v337_v42 }
 0x563   :  { %v313_v45 = vpop.permute.xlu1 %312  ;;  %v311_v46 = vpop.permute.xlu0 %310 }
 0x564   :  { %v315_v47 = vmax.f32 %v309_v43, %v313_v45  ;;  %v314_v48 = vmax.f32 %v308_v44, %v311_v46 }
 0x566   :  { %v320_v50 = vrot.slane %v315_v47, 1  ;;  %v328_v51 = vrot.slane %v315_v47, 2  ;;  %v319_v52 = vrot.slane %v314_v48, 1  ;;  %v327_v53 = vrot.slane %v314_v48, 2 }
 0x567   :  { %v345_v55 = vpop.permute.xlu1 %344  ;;  %v343_v56 = vpop.permute.xlu0 %342 }
 0x568   :  { %v325_v57 = vmax.f32 %v315_v47, %v320_v50  ;;  %v321_v58 = vsel %vm318_vm4, %v319_v52, %v320_v50  ;;  %v347_v59 = vmax.f32 %v341_v49, %v345_v55  ;;  %v346_v61 = vmax.f32 %v340_v54, %v343_v56 }
 0x569   :  { %v324_v60 = vmax.f32 %v314_v48, %v321_v58  ;;  %v329_v63 = vsel %vm326_vm5, %v327_v53, %v328_v51 }
 0x56a   :  { %v333_v62 = vmax.f32 %v325_v57, %v328_v51  ;;  %v351_v0 = vrot.slane %v347_v59, 1  ;;  %v358_v2 = vrot.slane %v347_v59, 2  ;;  %v350_v3 = vrot.slane %v346_v61, 1 }
 0x56b   :  { %v332_v1 = vmax.f32 %v324_v60, %v329_v63  ;;  %v357_v4 = vrot.slane %v346_v61, 2 }
 0x56c   :  { %335 = vst [vmem:[%s583_s3 + $0x8] sm:$0x3f] %v333_v62  ;;  %v356_v5 = vmax.f32 %v347_v59, %v351_v0  ;;  %v352_v6 = vsel %vm318_vm4, %v350_v3, %v351_v0 }
 0x56d   :  { %334 = vst [vmem:[%s583_s3] sm:$0xff] %v332_v1  ;;  %v355_v8 = vmax.f32 %v346_v61, %v352_v6  ;;  %v359_v9 = vsel %vm326_vm5, %v357_v4, %v358_v2 }
 0x56e   :  { %v363_v7 = vmax.f32 %v356_v5, %v358_v2 }
 0x56f   :  { %v362_v10 = vmax.f32 %v355_v8, %v359_v9 }
 0x570   :  { %392 = vst [vmem:[%s583_s3 + $0x18] sm:$0x3f] %v363_v7 }
 0x571   :  { %391 = vst [vmem:[%s583_s3 + $0x10] sm:$0xff] %v362_v10 }

</bundles_post_ra>
